<compile_context>
chip_gen: v7x
topology: tpu7x:2x2x1
jax: 0.10.0
libtpu: 0.0.40
codegen_flags: <defaults>
</compile_context>

<pallas_src>
import functools

import jax
import jax.numpy as jnp
from jax.experimental import pallas as pl
from jax.experimental.pallas import tpu as pltpu


def _attn_kernel(kstats_ref, x_ref, q_ref, k_ref, v_ref, o_ref, *, inv_scale):
    # Lane-dense layout: rows of the fused (B*Q) batch live on the lane axis.
    x = x_ref[...].astype(jnp.float32)                         # (S, TM)
    q = q_ref[...]                                             # (S, 1)
    k = k_ref[...]                                             # (K, 1)
    v = v_ref[...]                                             # (K, 1)

    # s_m = (1/sqrt(K)) * sum_s x[s, m] * q[s]  -- VPU multiply + XLU sublane
    # reduce; every matmul in this module is degenerate so the MXU is unused.
    s = jnp.sum(x * q, axis=0, keepdims=True) * inv_scale      # (1, TM)

    # Row max of a[j, m] = s_m * key[j] via hoisted, grid-invariant key stats:
    # max_j s*k_j = s*max(k) for s >= 0, s*min(k) otherwise.
    kmax = kstats_ref[0]
    kmin = kstats_ref[1]
    m = jnp.where(s >= 0.0, s * kmax, s * kmin)                # (1, TM)

    # Stable exponentials of the (K, TM) score map (EUP exp, fully lane-dense).
    e = jnp.exp(s * k - m)                                     # (K, TM)

    # out_m = (sum_j e[j,m] * v[j]) / (sum_j e[j,m]);  den >= 1 always since
    # the max-attaining term contributes exp(0) = 1.
    num = jnp.sum(e * v, axis=0, keepdims=True)                # (1, TM)
    den = jnp.sum(e, axis=0, keepdims=True)                    # (1, TM)
    r = pl.reciprocal(den, approx=True)                        # EUP vrcp
    r = r * (2.0 - den * r)                                    # one Newton step -> ~f32
    # dropout(p, 0.0) is the identity (deterministic / eval mode).
    # TODO(synk): for dropout_p > 0 use pltpu.prng_seed + pltpu.stateful_bernoulli.
    o_ref[...] = num * r                                       # lane-dense (1, TM) store


def _choose_row_tile(m, s, itemsize,
                     target_tile_bytes=2 << 20,
                     vmem_budget_bytes=12 << 20):
    """Pick the lane-axis tile TM (multiple of 128) for the fused row dim M."""
    def _down128(n):
        return max(128, (n // 128) * 128)

    m_pad = pl.cdiv(m, 128) * 128
    # ~2 MiB of x per grid step amortizes the ~0.35 us per-step overhead.
    tm = _down128(target_tile_bytes // (s * itemsize))
    # Double-buffered x tiles must fit v5e's 16 MiB default scoped VMEM
    # (and leave headroom on v7x's 64 MiB physical VMEM).
    tm = min(tm, _down128(vmem_budget_bytes // (2 * s * itemsize)))
    # Keep >= 2 grid steps when there are enough rows so the "parallel" axis
    # can be sharded across both v7x TensorCores.
    if m_pad >= 2 * 128:
        tm = min(tm, pl.cdiv(m_pad // 2, 128) * 128)
    return min(tm, m_pad)


def model_forward(x, query, key, value):
    """x: (B, Q, S); query: (S,); key: (K,); value: (K,) -> (B, Q) f32."""
    B, Q, S = x.shape
    K = key.shape[0]
    assert query.shape[0] == S, "query_size must equal seq_length for the first matmul"
    assert value.shape[0] == K, "value_size must equal key_size for the final matmul"
    M = B * Q
    inv_scale = float(1.0 / (K ** 0.5))

    # TODO(synk): for sub-vreg workloads (M*S of a few KB) fall through to the
    # fused pure-JAX path (model_forward_ref); pallas_call fixed cost dominates.

    # Stream x in bf16 if it already is bf16 (halves the HBM-bound read on
    # v6e/v7x); otherwise f32.  Compute is f32 in-kernel either way.
    x_dtype = jnp.bfloat16 if x.dtype == jnp.bfloat16 else jnp.float32
    itemsize = 2 if x_dtype == jnp.bfloat16 else 4

    # Lane-dense layout: rows (M) on the 128-wide lane axis, S on sublanes.
    # TODO(synk): if the producer can emit x already as (S, M), drop this
    # transpose (it costs one extra HBM pass outside the kernel).
    xt = x.reshape(M, S).astype(x_dtype).T                     # (S, M)

    TM = _choose_row_tile(M, S, itemsize)
    n_tiles = pl.cdiv(M, TM)
    M_pad = n_tiles * TM
    if M_pad != M:
        # Zero-padded lanes stay finite (s=0 -> e=1, den=K) and are sliced off.
        xt = jnp.pad(xt, ((0, 0), (0, M_pad - M)))

    q2 = query.reshape(S, 1).astype(jnp.float32)
    k2 = key.reshape(K, 1).astype(jnp.float32)
    v2 = value.reshape(K, 1).astype(jnp.float32)
    # Hoisted, grid-invariant key stats; read from SMEM inside the kernel.
    kstats = jnp.stack([jnp.max(key), jnp.min(key)]).astype(jnp.float32)

    out = pl.pallas_call(
        functools.partial(_attn_kernel, inv_scale=inv_scale),
        out_shape=jax.ShapeDtypeStruct((1, M_pad), jnp.float32),
        grid=(n_tiles,),
        in_specs=[
            pl.BlockSpec(memory_space=pltpu.MemorySpace.SMEM),   # kmax/kmin scalars
            # TODO(synk): add pipeline_mode=pl.Buffered(3) here only if a trace
            # shows exposed DMA after tile resizing (costs one extra TMxS buffer).
            pl.BlockSpec((S, TM), lambda i: (0, i)),             # x tile, pipelined
            pl.BlockSpec((S, 1), lambda i: (0, 0)),              # query, VMEM-resident
            pl.BlockSpec((K, 1), lambda i: (0, 0)),              # key, VMEM-resident
            pl.BlockSpec((K, 1), lambda i: (0, 0)),              # value, VMEM-resident
        ],
        out_specs=pl.BlockSpec((1, TM), lambda i: (0, i)),       # lane-dense output
        compiler_params=pltpu.CompilerParams(
            dimension_semantics=("parallel",)),
    )(kstats, xt, q2, k2, v2)

    return out[0, :M].reshape(B, Q)


def model_forward_ref(x, query, key, value):
    """Pure-JAX reference matching the PyTorch forward (dropout_p = 0)."""
    K = key.shape[0]
    hi = jax.lax.Precision.HIGHEST
    s = jnp.einsum("bqs,s->bq", x, query, precision=hi)        # (B, Q)
    a = s[..., None] * key[None, None, :]                      # (B, Q, K)
    a = a * (1.0 / jnp.sqrt(jnp.float32(K)))
    p = jax.nn.softmax(a, axis=-1)
    return jnp.einsum("bqk,k->bq", p, value, precision=hi)     # (B, Q)


if __name__ == "__main__":
    # The PyTorch matmuls require seq_length == query_size (first matmul) and
    # value_size == key_size (last matmul).  M = B*Q = 256 -> two 128-lane tiles,
    # so the "parallel" grid axis has work for both v7x TensorCores.
    batch_size = 4
    query_size = 64    # also used as seq_length
    seq_length = 64
    key_size = 32
    value_size = 32

    root = jax.random.PRNGKey(0)
    kx, kq, kk, kv = jax.random.split(root, 4)
    x = jax.random.normal(kx, (batch_size, query_size, seq_length), dtype=jnp.float32)
    query = jax.random.normal(kq, (seq_length,), dtype=jnp.float32)
    key = jax.random.normal(kk, (key_size,), dtype=jnp.float32)
    value = jax.random.normal(kv, (value_size,), dtype=jnp.float32)

    out = jax.block_until_ready(model_forward(x, query, key, value))

    ref = model_forward_ref(x, query, key, value)
    assert out.shape == (batch_size, query_size)
    assert jnp.allclose(out, ref, atol=1e-5, rtol=1e-5), "mismatch vs pure-JAX reference"

    print("KERNEL_OK")
</pallas_src>

<mosaic_0001>
module attributes {stable_mosaic.version = 11 : i64} {
  func.func @_attn_kernel(%arg0: i32, %arg1: memref<2xf32, #tpu.memory_space<smem>>, %arg2: memref<64x128xf32, #tpu.memory_space<vmem>>, %arg3: memref<64x1xf32, #tpu.memory_space<vmem>>, %arg4: memref<32x1xf32, #tpu.memory_space<vmem>>, %arg5: memref<32x1xf32, #tpu.memory_space<vmem>>, %arg6: memref<1x128xf32, #tpu.memory_space<vmem>>) attributes {dimension_semantics = [#tpu.dimension_semantics<parallel>], iteration_bounds = array<i64: 2>, scalar_prefetch = 0 : i64, scratch_operands = 0 : i64, tpu.core_type = #tpu.core_type<tc>, window_params = [{transform_indices = @transform_0, window_bounds = array<i64: 2>}, {transform_indices = @transform_1, window_bounds = array<i64: 64, 128>}, {pipeline_mode = #tpu.pipeline_mode<synchronous>, transform_indices = @transform_2, window_bounds = array<i64: 64, 1>}, {pipeline_mode = #tpu.pipeline_mode<synchronous>, transform_indices = @transform_3, window_bounds = array<i64: 32, 1>}, {pipeline_mode = #tpu.pipeline_mode<synchronous>, transform_indices = @transform_4, window_bounds = array<i64: 32, 1>}, {transform_indices = @transform_5, window_bounds = array<i64: 1, 128>}]} {
    %c0 = arith.constant 0 : index
    %c0_0 = arith.constant 0 : index
    %0 = vector.load %arg2[%c0, %c0_0] : memref<64x128xf32, #tpu.memory_space<vmem>>, vector<64x128xf32>
    %c0_1 = arith.constant 0 : index
    %c0_2 = arith.constant 0 : index
    %1 = vector.load %arg3[%c0_1, %c0_2] : memref<64x1xf32, #tpu.memory_space<vmem>>, vector<64x1xf32>
    %c0_3 = arith.constant 0 : index
    %c0_4 = arith.constant 0 : index
    %2 = vector.load %arg4[%c0_3, %c0_4] : memref<32x1xf32, #tpu.memory_space<vmem>>, vector<32x1xf32>
    %c0_5 = arith.constant 0 : index
    %c0_6 = arith.constant 0 : index
    %3 = vector.load %arg5[%c0_5, %c0_6] : memref<32x1xf32, #tpu.memory_space<vmem>>, vector<32x1xf32>
    %4 = vector.broadcast %1 : vector<64x1xf32> to vector<64x128xf32>
    %5 = arith.mulf %0, %4 : vector<64x128xf32>
    %cst = arith.constant dense<0.000000e+00> : vector<128xf32>
    %6 = vector.multi_reduction <add>, %5, %cst [0] : vector<64x128xf32> to vector<128xf32>
    %7 = vector.shape_cast %6 : vector<128xf32> to vector<1x128xf32>
    %cst_7 = arith.constant 0.176776692 : f32
    %8 = vector.broadcast %cst_7 : f32 to vector<1x128xf32>
    %9 = arith.mulf %7, %8 : vector<1x128xf32>
    %c0_8 = arith.constant 0 : index
    %10 = memref.load %arg1[%c0_8] : memref<2xf32, #tpu.memory_space<smem>>
    %c1 = arith.constant 1 : index
    %11 = memref.load %arg1[%c1] : memref<2xf32, #tpu.memory_space<smem>>
    %cst_9 = arith.constant 0.000000e+00 : f32
    %12 = vector.broadcast %cst_9 : f32 to vector<1x128xf32>
    %13 = arith.cmpf oge, %9, %12 : vector<1x128xf32>
    %14 = vector.broadcast %10 : f32 to vector<1x128xf32>
    %15 = arith.mulf %9, %14 : vector<1x128xf32>
    %16 = vector.broadcast %11 : f32 to vector<1x128xf32>
    %17 = arith.mulf %9, %16 : vector<1x128xf32>
    %18 = arith.select %13, %15, %17 : vector<1x128xi1>, vector<1x128xf32>
    %19 = vector.broadcast %9 : vector<1x128xf32> to vector<32x128xf32>
    %20 = vector.broadcast %2 : vector<32x1xf32> to vector<32x128xf32>
    %21 = arith.mulf %19, %20 : vector<32x128xf32>
    %22 = vector.broadcast %18 : vector<1x128xf32> to vector<32x128xf32>
    %23 = arith.subf %21, %22 : vector<32x128xf32>
    %24 = math.exp %23 : vector<32x128xf32>
    %25 = vector.broadcast %3 : vector<32x1xf32> to vector<32x128xf32>
    %26 = arith.mulf %24, %25 : vector<32x128xf32>
    %cst_10 = arith.constant dense<0.000000e+00> : vector<128xf32>
    %27 = vector.multi_reduction <add>, %26, %cst_10 [0] : vector<32x128xf32> to vector<128xf32>
    %28 = vector.shape_cast %27 : vector<128xf32> to vector<1x128xf32>
    %cst_11 = arith.constant dense<0.000000e+00> : vector<128xf32>
    %29 = vector.multi_reduction <add>, %24, %cst_11 [0] : vector<32x128xf32> to vector<128xf32>
    %30 = vector.shape_cast %29 : vector<128xf32> to vector<1x128xf32>
    %31 = tpu.reciprocal %30 {approx = true} : vector<1x128xf32> -> vector<1x128xf32>
    %32 = arith.mulf %30, %31 : vector<1x128xf32>
    %cst_12 = arith.constant 2.000000e+00 : f32
    %33 = vector.broadcast %cst_12 : f32 to vector<1x128xf32>
    %34 = arith.subf %33, %32 : vector<1x128xf32>
    %35 = arith.mulf %31, %34 : vector<1x128xf32>
    %36 = arith.mulf %28, %35 : vector<1x128xf32>
    %c0_13 = arith.constant 0 : index
    %c0_14 = arith.constant 0 : index
    %37 = vector.load %arg6[%c0_13, %c0_14] : memref<1x128xf32, #tpu.memory_space<vmem>>, vector<1x128xf32>
    tpu.vector_store %arg6[%c0_13, %c0_14], %36 {strides = array<i32>} : memref<1x128xf32, #tpu.memory_space<vmem>>, vector<1x128xf32>,
    return
  }
  func.func @transform_0(%arg0: i32) -> i32 {
    %c0_i32 = arith.constant 0 : i32
    %c0_i32_0 = arith.constant 0 : i32
    return %c0_i32 : i32
  }
  func.func @transform_1(%arg0: i32) -> (i32, i32) {
    %c0_i32 = arith.constant 0 : i32
    %c0_i32_0 = arith.constant 0 : i32
    return %c0_i32, %arg0 : i32, i32
  }
  func.func @transform_2(%arg0: i32) -> (i32, i32) {
    %c0_i32 = arith.constant 0 : i32
    %c0_i32_0 = arith.constant 0 : i32
    %c0_i32_1 = arith.constant 0 : i32
    return %c0_i32, %c0_i32_0 : i32, i32
  }
  func.func @transform_3(%arg0: i32) -> (i32, i32) {
    %c0_i32 = arith.constant 0 : i32
    %c0_i32_0 = arith.constant 0 : i32
    %c0_i32_1 = arith.constant 0 : i32
    return %c0_i32, %c0_i32_0 : i32, i32
  }
  func.func @transform_4(%arg0: i32) -> (i32, i32) {
    %c0_i32 = arith.constant 0 : i32
    %c0_i32_0 = arith.constant 0 : i32
    %c0_i32_1 = arith.constant 0 : i32
    return %c0_i32, %c0_i32_0 : i32, i32
  }
  func.func @transform_5(%arg0: i32) -> (i32, i32) {
    %c0_i32 = arith.constant 0 : i32
    %c0_i32_0 = arith.constant 0 : i32
    return %c0_i32, %arg0 : i32, i32
  }
}

</mosaic_0001>

<bundles_post_ra>
// kernel: tpu_custom_call.1
= control target key start
LH: loop header
LB: loop body
LE: loop exit
PB: predicated region body
PF: predicated region fallthrough
CT: control target
= control target key end

     0   :  { %10 = vsyncpa [#allocation4], 0  ;;  %s946_s0 = inlined_call_operand.vmem [shape: f32[2], index: 0, kind: input, shape index: {}]   ;;  %s947_s1 = inlined_call_operand.vmem [shape: f32[64,256], index: 1, kind: input, shape index: {}]   ;;  %s948_s2 = inlined_call_operand.vmem [shape: f32[64,1], index: 2, kind: input, shape index: {}]   ;;  %s949_s3 = inlined_call_operand.vmem [shape: f32[32,1], index: 3, kind: input, shape index: {}]   ;;  %s950_s4 = inlined_call_operand.vmem [shape: f32[32,1], index: 4, kind: input, shape index: {}]   ;;  %s951_s5 = inlined_call_operand.hbm [shape: f32[1,256], index: 5, kind: output, shape index: {}]  }
   0x1   :  { %11 = vsyncpa [#allocation3], 0 }
   0x2   :  { %13 = vsyncpa [#allocation3 + $0x1], 0  ;;  %s754_s18 = smov 0   ;;  %s756_s19 = smov 0  }
   0x3   :  { %s758_s20 = smov 0   ;;  %s760_s21 = smov 0  }
   0x4 LB: > { %s775_s22 = sadd.s32 4294967295, %s719_s21   ;;  %s562_s23 = sadd.s32 4294967294, %s719_s21   ;;  %s719_s21 = sphi %s760_s21, %s962_s21   ;;  %s715_s20 = sphi %s758_s20, %s961_s20   ;;  %s711_s19 = sphi %s756_s19, %s960_s19   ;;  %s707_s18 = sphi %s754_s18, %s959_s18  }
   0x5   : > { %s779_s24 = sadd.s32 1, %s719_s21   ;;  %s47_s25 = sadd.s32 1, %s715_s20 }
   0x6   : > { %s44_s26 = ssub.s32 %s719_s21, %s779_s24  ;;  %p54_p0 = scmp.ne.s32.totalorder %s715_s20, %s711_s19 }
   0x7   : > { %p45_p1 = scmp.eq.s32.totalorder %s44_s26, 0  ;;  %p55_p2 = scmp.eq.s32.totalorder %s719_s21, 0 }
   0x8   : > { %p147_p3 = scmp.eq.s32.totalorder %s775_s22, 1  ;;  %p152_p4 = scmp.ne.s32.totalorder %s711_s19, %s707_s18 }
   0x9   : > { %s791_s27 = scalar_select %p45_p1, %s715_s20, %s47_s25  }
   0xa   : > { %p793_p5 = por %p55_p2, %p54_p0  ;;  %p797_p6 = por %p147_p3, %p54_p0 }
   0xb   : > { %p153_p7 = scmp.eq.s32.totalorder %s562_s23, 1  ;;  %p563_p8 = scmp.ge.s32.totalorder %s719_s21, 1 }
   0xc   : > { %s954_s29 = scalar_select %p797_p6, 1, 0 }
   0xd   : > { %p160_p9 = scmp.lt.s32.totalorder %s719_s21, 3  ;;  %p803_p10 = por %p153_p7, %p152_p4 }
   0xe   : > { %p589_p11 = scmp.eq.s32.totalorder %s775_s22, 0  ;;  %s173_s9 = sshll.u32 %s946_s0, 4  ;;  %s174_s9 = int_to_ptr.vmem [resolvable:$true] %s173_s9 }
   0xf   : > { %s955_s30 = scalar_select %p803_p10, 1, 0 }
  0x10   : > { %p808_p12 = pnand %p563_p8, %p160_p9  ;;  %s638_s10 = scalar_lea.vmem %s174_s9, 16 }
  0x11   : > { %p639_p1 = scmp.ne.s32.totalorder %s174_s9, %s638_s10  ;;  %p646_p7 = scmp.lt.s32.totalorder %s174_s9, %s174_s9 }
  0x12   : > { %p581_p13 = pneg %p808_p12  ;;  %p647_p8 = scmp.lt.s32.totalorder %s638_s10, %s638_s10 }
  0x14   : > { %p582_p0 = pnand %p589_p11, %p581_p13  ;;  %p648_p9 = por %p647_p8, %p646_p7 }
  0x16   : > { %p640_p2 = pneg %p582_p0 }
  0x18   : > { %p641_p3 = pnand %p640_p2, %p639_p1 }
  0x1a   : > { %p642_p4 = pneg %p641_p3 }
  0x1c   : > { %p649_p10 = pnand %p648_p9, %p642_p4 }
  0x1e   : > { %652 = shalt.err (!%p649_p10)
}
  0x1f   : > { %s721_s11 = smov [#allocation2]   ;;  %p565_p6 = scmp.ge.s32.totalorder %s719_s21, 2 }
  0x20   : > { %584 = dma.vmem_to_smem (!%p582_p0), %s174_s9, 16, %s721_s11, [#allocation4]  }
  0x21   : > { %189 = sbr.rel (%p565_p6) target bundleno = 48 (0x30), region = 32 }
  0x28   : > { %192 = sbr.rel (!%p793_p5) target bundleno = 48 (0x30), region = 36  ;;  %s194_s12 = sand.u32 (%p793_p5), 1, %s715_s20  }
  0x29   : > { %s567_s13 = sshll.u32 (%p793_p5), %s719_s21, 3  ;;  %s566_s14 = sshll.u32 (%p793_p5), %s194_s12, 6 }
  0x2a   : > { %s198_s17 = scalar_lea.vmem (%p793_p5), %s947_s1, %s567_s13  ;;  %s196_s23 = scalar_lea.vmem (%p793_p5), [#allocation5], %s566_s14 }
  0x2b   : > { %v240_v0 = vld [vmem:[%s198_s17] sm:$0xff] (%p793_p5)  ;;  %v242_v1 = vld [vmem:[%s198_s17 + $0x10] sm:$0xff] (%p793_p5) }
  0x2c   : > { %v244_v2 = vld [vmem:[%s198_s17 + $0x20] sm:$0xff] (%p793_p5)  ;;  %241 = vst [vmem:[%s196_s23] sm:$0xff] (%p793_p5), %v240_v0  ;;  %243 = vst [vmem:[%s196_s23 + $0x8] sm:$0xff] (%p793_p5), %v242_v1  ;;  %v246_v3 = vld [vmem:[%s198_s17 + $0x30] sm:$0xff] (%p793_p5) }
  0x2d   : > { %245 = vst [vmem:[%s196_s23 + $0x10] sm:$0xff] (%p793_p5), %v244_v2  ;;  %v248_v4 = vld [vmem:[%s198_s17 + $0x40] sm:$0xff] (%p793_p5)  ;;  %v250_v5 = vld [vmem:[%s198_s17 + $0x50] sm:$0xff] (%p793_p5)  ;;  %247 = vst [vmem:[%s196_s23 + $0x18] sm:$0xff] (%p793_p5), %v246_v3 }
  0x2e   : > { %249 = vst [vmem:[%s196_s23 + $0x20] sm:$0xff] (%p793_p5), %v248_v4  ;;  %251 = vst [vmem:[%s196_s23 + $0x28] sm:$0xff] (%p793_p5), %v250_v5  ;;  %v252_v6 = vld [vmem:[%s198_s17 + $0x60] sm:$0xff] (%p793_p5)  ;;  %v254_v7 = vld [vmem:[%s198_s17 + $0x70] sm:$0xff] (%p793_p5) }
  0x2f   : > { %253 = vst [vmem:[%s196_s23 + $0x30] sm:$0xff] %v252_v6  ;;  %255 = vst [vmem:[%s196_s23 + $0x38] sm:$0xff] %v254_v7 }
  0x30 PF: > { %264 = sbr.rel (%p808_p12) target bundleno = 294 (0x126), region = 74 }
  0x37   : > { %698 = dma.done.wait (%p589_p11), [#allocation4], 16  }
  0x38   : > { %700 = vsyncadd (%p589_p11), [#allocation4], 4294967280  ;;  %s836_s25 = sand.u32 1, %s711_s19  }
  0x39   : > { %s570_s26 = sshll.u32 %s836_s25, 6 }
  0x3a   : > { %s839_s28 = scalar_lea.vmem [#allocation5], %s570_s26 }
  0x3b   : > { %277 = sfence }
  0x3c   : > { %v308_v8 = vld [vmem:[%s948_s2 + $0x10] sm:$0xff]  ;;  %v306_v9 = vld [vmem:[%s948_s2] sm:$0xff]  ;;  %v722_v10 = vmov 0   ;;  %v309_v11 = vld [vmem:[%s948_s2 + $0x18] sm:$0xff]  ;;  %s384_s10 = sld [smem:[#allocation2]]  ;;  %s571_s11 = sld [smem:[#allocation2 + $0x1]] }
  0x3d   : > { %627 = vset.pattern.permute.xlu1 %v722_v10  ;;  %626 = vset.pattern.permute.xlu0 %v722_v10  ;;  %v307_v12 = vld [vmem:[%s948_s2 + $0x8] sm:$0xff]  ;;  %v310_v14 = vld [vmem:[%s948_s2 + $0x20] sm:$0xff]  ;;  %v313_v15 = vld [vmem:[%s948_s2 + $0x38] sm:$0xff]  ;;  %s297_s12 = scalar_lea.vmem [#allocation6], %s836_s25  ;;  %s477_s17 = scalar_lea.sflag [#allocation3], %s836_s25 }
  0x3e   : > { %334 = vperm.xlu1 %627, %v308_v8   ;;  %324 = vperm.xlu0 %626, %v306_v9   ;;  %v311_v13 = vld [vmem:[%s948_s2 + $0x28] sm:$0xff]  ;;  %v312_v16 = vld [vmem:[%s948_s2 + $0x30] sm:$0xff]  ;;  %v314_v18 = vld [vmem:[%s949_s3] sm:$0xff]  ;;  %s489_s13 = sshll.u32 %s297_s12, 4  ;;  %p957_p10 = scmp.ne.s32.totalorder %s954_s29, 0  ;;  %s904_s13 = int_to_ptr.vmem [resolvable:$true] %s489_s13 }
  0x3f   : > { %v315_v17 = vld [vmem:[%s949_s3 + $0x8] sm:$0xff]  ;;  %v317_v19 = vld [vmem:[%s949_s3 + $0x18] sm:$0xff]  ;;  %v316_v20 = vld [vmem:[%s949_s3 + $0x10] sm:$0xff]  ;;  %s653_s23 = scalar_lea.vmem %s904_s13, 16 }
  0x40   : > { %v319_v21 = vld [vmem:[%s950_s4 + $0x8] sm:$0xff]  ;;  %v318_v22 = vld [vmem:[%s950_s4] sm:$0xff]  ;;  %v321_v23 = vld [vmem:[%s950_s4 + $0x18] sm:$0xff]  ;;  %p654_p5 = scmp.ne.s32.totalorder %s904_s13, %s653_s23 }
  0x41   : > { %v320_v24 = vld [vmem:[%s950_s4 + $0x10] sm:$0xff]  ;;  %v298_v27 = vld [vmem:[%s839_s28] sm:$0xff]  ;;  %v299_v28 = vld [vmem:[%s839_s28 + $0x8] sm:$0xff] }
  0x42   : > { %339 = vperm.xlu1 %627, %v309_v11   ;;  %329 = vperm.xlu0 %626, %v307_v12   ;;  %v300_v29 = vld [vmem:[%s839_s28 + $0x10] sm:$0xff]  ;;  %v301_v34 = vld [vmem:[%s839_s28 + $0x18] sm:$0xff]  ;;  %v302_v39 = vld [vmem:[%s839_s28 + $0x20] sm:$0xff]  ;;  %v387_v0 = vstv %s384_s10  ;;  %p655_p11 = pnand %p654_p5, %p957_p10 }
  0x43   : > { %v303_v42 = vld [vmem:[%s839_s28 + $0x28] sm:$0xff]  ;;  %v304_v46 = vld [vmem:[%s839_s28 + $0x30] sm:$0xff]  ;;  %v305_v50 = vld [vmem:[%s839_s28 + $0x38] sm:$0xff]  ;;  %v389_v1 = vstv %s571_s11  ;;  %s572_s28 = sshll.u32 %s775_s22, 4  ;;  %s723_s22 = smov [#allocation6]  }
  0x44   : > { %s902_s16 = scalar_lea.hbm %s951_s5, %s572_s28  ;;  %p656_p12 = pneg %p655_p11 }
  0x45   : > { %s657_s26 = sshll.u32 %s723_s22, 4  ;;  %s658_s26 = int_to_ptr.vmem [resolvable:$false] %s657_s26 }
  0x46   : > { %349 = vperm.xlu1 %627, %v311_v13   ;;  %344 = vperm.xlu0 %626, %v310_v14   ;;  %s659_s7 = scalar_lea.vmem %s658_s26, 32  ;;  %p660_p13 = scmp.lt.s32.totalorder %s904_s13, %s658_s26 }
  0x47   : > { %p661_p0 = scmp.lt.s32.totalorder %s659_s7, %s653_s23 }
  0x49   : > { %p662_p1 = por %p661_p0, %p660_p13 }
  0x4a   : > { %359 = vperm.xlu1 %627, %v313_v15   ;;  %354 = vperm.xlu0 %626, %v312_v16  }
  0x4b   : > { %p663_p2 = pnand %p662_p1, %p656_p12 }
  0x4e   : > { %399 = vperm.xlu1 %627, %v315_v17   ;;  %394 = vperm.xlu0 %626, %v314_v18  }
  0x52   : > { %409 = vperm.xlu1 %627, %v317_v19   ;;  %404 = vperm.xlu0 %626, %v316_v20  }
  0x56   : > { %435 = vperm.xlu1 %627, %v319_v21   ;;  %430 = vperm.xlu0 %626, %v318_v22  }
  0x5a   : > { %445 = vperm.xlu1 %627, %v321_v23   ;;  %440 = vperm.xlu0 %626, %v320_v24  }
  0xbd   : > { %v335_v25 = vpop.permute.xlu1 %334  ;;  %v325_v26 = vpop.permute.xlu0 %324 }
  0xbe   : > { %v362_v32 = vmul.f32 %v325_v26, %v298_v27  ;;  %v364_v35 = vmul.f32 %v335_v25, %v300_v29 }
  0xc1   : > { %v340_v30 = vpop.permute.xlu1 %339  ;;  %v330_v31 = vpop.permute.xlu0 %329 }
  0xc2   : > { %v363_v33 = vmul.f32 %v330_v31, %v299_v28  ;;  %v365_v40 = vmul.f32 %v340_v30, %v301_v34 }
  0xc4   : > { %v370_v36 = vadd.f32 %v363_v33, %v362_v32 }
  0xc5   : > { %v350_v37 = vpop.permute.xlu1 %349  ;;  %v345_v38 = vpop.permute.xlu0 %344 }
  0xc6   : > { %v371_v41 = vadd.f32 %v370_v36, %v364_v35  ;;  %v366_v43 = vmul.f32 %v345_v38, %v302_v39  ;;  %v367_v47 = vmul.f32 %v350_v37, %v303_v42 }
  0xc8   : > { %v372_v44 = vadd.f32 %v371_v41, %v365_v40 }
  0xc9   : > { %v355_v45 = vpop.permute.xlu0 %354  ;;  %v360_v49 = vpop.permute.xlu1 %359 }
  0xca   : > { %v373_v48 = vadd.f32 %v372_v44, %v366_v43  ;;  %v368_v51 = vmul.f32 %v355_v45, %v304_v46  ;;  %v369_v53 = vmul.f32 %v360_v49, %v305_v50 }
  0xcc   : > { %v374_v52 = vadd.f32 %v373_v48, %v367_v47 }
  0xcd   : > { %v400_v61 = vpop.permute.xlu1 %399  ;;  %v395_v62 = vpop.permute.xlu0 %394 }
  0xce   : > { %v375_v54 = vadd.f32 %v374_v52, %v368_v51 }
  0xd0   : > { %v376_v55 = vadd.f32 %v375_v54, %v369_v53 }
  0xd1   : > { %v410_v6 = vpop.permute.xlu1 %409  ;;  %v405_v7 = vpop.permute.xlu0 %404 }
  0xd2   : > { %v377_v56 = vrot.slane %v376_v55, 4 }
  0xd4   : > { %v378_v57 = vadd.f32 %v377_v56, %v376_v55 }
  0xd5   : > { %v431_v20 = vpop.permute.xlu0 %430  ;;  %v436_v22 = vpop.permute.xlu1 %435 }
  0xd6   : > { %v379_v58 = vrot.slane %v378_v57, 2 }
  0xd8   : > { %v380_v59 = vadd.f32 %v379_v58, %v378_v57 }
  0xd9   : > { %v441_v30 = vpop.permute.xlu0 %440  ;;  %v446_v35 = vpop.permute.xlu1 %445 }
  0xda   : > { %v381_v60 = vrot.slane %v380_v59, 1 }
  0xdc   : > { %v382_v63 = vadd.f32 %v381_v60, %v380_v59 }
  0xde   : > { %v383_v2 = vmul.f32 0.17677669, %v382_v63 }
  0xe0   : > { %vm386_vm0 = vcmp.ge.f32.partialorder %v383_v2, 0.0  ;;  %v388_v3 = vmul.f32 %v387_v0, %v383_v2  ;;  %v390_v4 = vmul.f32 %v389_v1, %v383_v2  ;;  %v413_v5 = vmul.f32 %v400_v61, %v383_v2 }
  0xe1   : > { %v412_v8 = vmul.f32 %v395_v62, %v383_v2  ;;  %v415_v9 = vmul.f32 %v410_v6, %v383_v2  ;;  %v414_v10 = vmul.f32 %v405_v7, %v383_v2 }
  0xe2   : > { %v391_v11 = vsel %vm386_vm0, %v388_v3, %v390_v4 }
  0xe3   : > { %v417_v12 = vsub.f32 %v413_v5, %v391_v11  ;;  %v416_v13 = vsub.f32 %v412_v8, %v391_v11  ;;  %v418_v14 = vsub.f32 %v414_v10, %v391_v11  ;;  %v419_v15 = vsub.f32 %v415_v9, %v391_v11 }
  0xe5   : > { %v422_v16 = vmul.f32 1.442695, %v417_v12  ;;  %v420_v17 = vmul.f32 1.442695, %v416_v13  ;;  %v424_v18 = vmul.f32 1.442695, %v418_v14 }
  0xe6   : > { %v426_v19 = vmul.f32 1.442695, %v419_v15 }
  0xe7   : > { %628 = vpow2.f32 %v422_v16 }
  0xe8   : > { %630 = vpow2.f32 %v420_v17 }
  0xe9   : > { %632 = vpow2.f32 %v424_v18 }
  0xea   : > { %634 = vpow2.f32 %v426_v19 }
  0xf1   : > { %v629_v21 = vpop.eup %628 }
  0xf2   : > { %v631_v23 = vpop.eup %630  ;;  %v449_v24 = vmul.f32 %v629_v21, %v436_v22 }
  0xf3   : > { %v461_v25 = vadd.f32 %v631_v23, %v629_v21  ;;  %v448_v26 = vmul.f32 %v631_v23, %v431_v20  ;;  %v633_v27 = vpop.eup %632 }
  0xf4   : > { %v635_v31 = vpop.eup %634  ;;  %v450_v32 = vmul.f32 %v633_v27, %v441_v30 }
  0xf5   : > { %v462_v28 = vadd.f32 %v633_v27, %v461_v25  ;;  %v452_v29 = vadd.f32 %v449_v24, %v448_v26  ;;  %v451_v37 = vmul.f32 %v635_v31, %v446_v35 }
  0xf7   : > { %v463_v33 = vadd.f32 %v635_v31, %v462_v28  ;;  %v453_v34 = vadd.f32 %v452_v29, %v450_v32 }
  0xf9   : > { %v464_v36 = vrot.slane %v463_v33, 4  ;;  %v454_v39 = vadd.f32 %v453_v34, %v451_v37 }
  0xfb   : > { %v465_v38 = vadd.f32 %v464_v36, %v463_v33  ;;  %v455_v42 = vrot.slane %v454_v39, 4 }
  0xfd   : > { %v466_v40 = vrot.slane %v465_v38, 2  ;;  %v456_v45 = vadd.f32 %v455_v42, %v454_v39 }
  0xff   : > { %v467_v41 = vadd.f32 %v466_v40, %v465_v38  ;;  %v457_v46 = vrot.slane %v456_v45, 2 }
 0x101   : > { %v468_v43 = vrot.slane %v467_v41, 1  ;;  %v458_v47 = vadd.f32 %v457_v46, %v456_v45 }
 0x103   : > { %v469_v44 = vadd.f32 %v468_v43, %v467_v41  ;;  %v459_v49 = vrot.slane %v458_v47, 1 }
 0x105   : > { %636 = vrcp.f32 %v469_v44  ;;  %v460_v52 = vadd.f32 %v459_v49, %v458_v47 }
 0x10f   : > { %v637_v48 = vpop.eup %636 }
 0x110   : > { %v471_v50 = vmul.f32 %v637_v48, %v469_v44 }
 0x112   : > { %v472_v51 = vsub.f32 2.0, %v471_v50 }
 0x114   : > { %v473_v53 = vmul.f32 %v637_v48, %v472_v51 }
 0x116   : > { %v474_v54 = vmul.f32 %v473_v53, %v460_v52 }
 0x118   : > { %475 = vst [vmem:[%s297_s12] sm:$0x1] %v474_v54 }
 0x119   : > { %666 = shalt.err (!%p663_p2)
}
 0x11a   : > { %s667_s25 = scalar_lea.hbm %s902_s16, 16  ;;  %s671_s9 = scalar_lea.hbm %s951_s5, 32 }
 0x11b   : > { %p668_p3 = scmp.ne.s32.totalorder %s902_s16, %s667_s25  ;;  %p672_p8 = scmp.lt.u32.totalorder %s902_s16, %s951_s5 }
 0x11c   : > { %p673_p9 = scmp.lt.u32.totalorder %s671_s9, %s667_s25  ;;  %p675_p11 = scmp.lt.u32.totalorder %s667_s25, %s902_s16 }
 0x11d   : > { %p669_p4 = pnand %p668_p3, %p957_p10 }
 0x11e   : > { %p674_p5 = por %p673_p9, %p672_p8 }
 0x11f   : > { %p670_p7 = pneg %p669_p4 }
 0x120   : > { %p676_p12 = por %p675_p11, %p674_p5 }
 0x122   : > { %p677_p13 = pnand %p676_p12, %p670_p7 }
 0x124   : > { %680 = shalt.err (!%p677_p13)
}
 0x125   : > { %579 = dma.vmem_to_hbm [thread:$0]  (%p957_p10), %s904_s13, 16, %s902_s16, %s477_s17  }
 0x126 PF: > { %s501_s28 = sand.u32 1, %s707_s18   ;;  %p958_p0 = scmp.ne.s32.totalorder %s955_s30, 0 }
 0x127   : > { %s502_s12 = scalar_lea.sflag [#allocation3], %s501_s28 }
 0x128   : > { %p586_p1 = pnand %p565_p6, %p958_p0 }
 0x12a   : > { %702 = dma.done.wait (!%p586_p1), %s502_s12, 16  }
 0x12b   : > { %704 = vsyncadd (!%p586_p1), %s502_s12, 4294967280  ;;  %p16_p2 = scmp.ge.s32.totalorder %s779_s24, 4   ;;  %s959_s18 = smov %s711_s19 }
 0x12c   : > { %s960_s19 = smov %s715_s20  ;;  %s961_s20 = smov %s791_s27 }
 0x12d   : > { %s962_s21 = smov %s779_s24  ;;  %18 = sbr.rel (!%p16_p2) target bundleno = 4 (0x4), region = 123 }
 0x134   :  { %506 = vsyncpa [#allocation3], 1 }
 0x135   :  { %508 = vsyncpa [#allocation3 + $0x1], 1 }
 0x136   :  { %509 = vsyncpa [#allocation4], 1 }
 0x137   :  { %511 = vsyncpa [#allocation4 + $0x1], 1 }

</bundles_post_ra>
